<compile_context>
chip_gen: v7x
topology: tpu7x:2x2x1
jax: 0.10.0
libtpu: 0.0.40
codegen_flags: <defaults>
</compile_context>

<pallas_src>
import jax
import jax.numpy as jnp
from jax.experimental import pallas as pl
from jax.experimental.pallas import tpu as pltpu


def _round_up(x, m):
    return ((x + m - 1) // m) * m


def make_mlp_kernel(num_layers: int, apply_softmax: bool):
    """Pallas kernel for the full MLP (+ optional row-wise softmax)."""

    def kernel(*refs):
        x_ref = refs[0]
        o_ref = refs[-1]
        param_refs = refs[1:-1]  # w1, b1, w2, b2, ..., wN, bN

        # Cast to bf16 in-kernel (no separate wrapper-side HBM pass over x).
        h = x_ref[...].astype(jnp.bfloat16)
        for i in range(num_layers):
            w = param_refs[2 * i][...]        # bf16 weights (VMEM-resident)
            b = param_refs[2 * i + 1][...]    # f32 bias
            # bf16 x bf16 matmul with f32 accumulation on the MXU.
            h = jnp.dot(h, w, preferred_element_type=jnp.float32) + b
            if i < num_layers - 1:            # ReLU between layers only
                # f32 max keeps one code path valid on v5e (no bf16 VPU);
                # bf16 cast feeds the next MXU pass.
                h = jnp.maximum(h, 0.0).astype(jnp.bfloat16)

        if apply_softmax:
            m = jnp.max(h, axis=1, keepdims=True)
            e = jnp.exp(h - m)
            s = jnp.sum(e, axis=1, keepdims=True)
            h = e / s                          # exact: rows sum to 1

        o_ref[...] = h.astype(o_ref.dtype)

    return kernel


def mlp_forward(x, params, *, tile_b=None, out_dtype=jnp.float32):
    """MLP forward pass with a Pallas kernel, tiled over the batch.

    params: list of (W, b), W: (d_in, d_out), b: (1, d_out).
    """
    B, d_in = x.shape
    num_layers = len(params)
    dims = [d_in] + [w.shape[1] for w, _ in params]
    d_out = dims[-1]
    apply_softmax = d_out > 1

    # Tile selection: the grid is a serial loop (1 TC on v5e/v6e), so fewer,
    # bigger steps win. Small batches -> one full-array block (always a legal
    # block shape). Large batches -> 1024-row tiles (multiple of 256 for MXU-M,
    # of 16 for bf16 sublanes); the ragged last block is clipped by Pallas.
    if tile_b is None:
        tile_b = B if B <= 1024 else 1024
    else:
        tile_b = max(1, min(int(tile_b), B))
        if tile_b < B:
            tile_b = _round_up(tile_b, 16)
    num_tiles = pl.cdiv(B, tile_b)

    flat_params = []
    param_specs = []
    params_bytes = 0
    for w, b in params:
        w_bf = w.astype(jnp.bfloat16)   # tiny one-time cast; block stays resident
        b_f32 = b.astype(jnp.float32)
        flat_params.extend([w_bf, b_f32])
        # Whole-array, grid-resident blocks (constant index map -> no re-DMA).
        param_specs.append(pl.BlockSpec(w.shape, lambda i: (0, 0)))
        param_specs.append(pl.BlockSpec(b.shape, lambda i: (0, 0)))
        params_bytes += w_bf.size * 2 + b_f32.size * 4

    x_spec = pl.BlockSpec((tile_b, d_in), lambda i: (i, 0))
    out_spec = pl.BlockSpec((tile_b, d_out), lambda i: (i, 0))
    out_shape = jax.ShapeDtypeStruct((B, d_out), out_dtype)

    # Right-sized VMEM budget (v7x: 64 MiB physical): double-buffered x/out
    # tiles + resident params + activations, with generous slack.
    x_bytes = x.dtype.itemsize
    o_bytes = jnp.dtype(out_dtype).itemsize
    act_bytes = tile_b * sum(dims[1:]) * 4
    need = (2 * tile_b * (d_in * x_bytes + d_out * o_bytes)
            + params_bytes + act_bytes)
    vmem_limit = int(min(max(4 * need + (1 << 20), 16 * 1024 * 1024),
                         48 * 1024 * 1024))

    flops = 2 * B * sum(a * b for a, b in zip(dims[:-1], dims[1:]))
    transcendentals = B * d_out if apply_softmax else 0
    bytes_accessed = B * d_in * x_bytes + params_bytes + B * d_out * o_bytes

    kernel = make_mlp_kernel(num_layers, apply_softmax)
    return pl.pallas_call(
        kernel,
        out_shape=out_shape,
        grid_spec=pltpu.PrefetchScalarGridSpec(
            num_scalar_prefetch=0,
            grid=(num_tiles,),
            in_specs=[x_spec] + param_specs,
            out_specs=out_spec,
        ),
        compiler_params=pltpu.CompilerParams(
            dimension_semantics=("parallel",),
            vmem_limit_bytes=vmem_limit,
        ),
        cost_estimate=pl.CostEstimate(
            flops=flops,
            transcendentals=transcendentals,
            bytes_accessed=bytes_accessed,
        ),
    )(x, *flat_params)


def init_mlp_params(key, dimensions):
    """Deterministic init matching nn.Linear shapes (W stored as (in, out))."""
    params = []
    for d_in, d_out in zip(dimensions[:-1], dimensions[1:]):
        key, kw, kb = jax.random.split(key, 3)
        bound = 1.0 / jnp.sqrt(d_in)  # torch.nn.Linear default init range
        w = jax.random.uniform(kw, (d_in, d_out), jnp.float32, -bound, bound)
        b = jax.random.uniform(kb, (1, d_out), jnp.float32, -bound, bound)
        params.append((w, b))
    return params


def mlp_reference(x, params, *, match_kernel_precision=True):
    """Plain-JAX reference. If match_kernel_precision, operands are rounded
    to bf16 before each matmul (as the kernel does), accumulation in f32."""

    def cast(a):
        if match_kernel_precision:
            return a.astype(jnp.bfloat16).astype(jnp.float32)
        return a.astype(jnp.float32)

    h = x.astype(jnp.float32)
    for i, (w, b) in enumerate(params):
        h = jnp.dot(cast(h), cast(w), preferred_element_type=jnp.float32)
        h = h + b.astype(jnp.float32)
        if i < len(params) - 1:
            h = jnp.maximum(h, 0.0)
    d_out = params[-1][0].shape[1]
    if d_out > 1:
        h = jax.nn.softmax(h, axis=1)
    return h


if __name__ == "__main__":
    # MLP(dimensions=[32, 64, 48, 16]) -> Linear+ReLU, Linear+ReLU, Linear,
    # then softmax over dim=1 since dim_out = 16 > 1.
    dimensions = [32, 64, 48, 16]

    key = jax.random.PRNGKey(0)
    key, kx = jax.random.split(key)
    params = init_mlp_params(key, dimensions)

    # Case 1: small batch -> single grid step, exact full-array block.
    batch = 16
    x = jax.random.normal(kx, (batch, dimensions[0]), dtype=jnp.float32)
    out = jax.block_until_ready(mlp_forward(x, params))
    assert out.shape == (batch, dimensions[-1])
    ref_bf = mlp_reference(x, params, match_kernel_precision=True)
    ref_f32 = mlp_reference(x, params, match_kernel_precision=False)
    assert jnp.allclose(out, ref_bf, atol=5e-3, rtol=5e-3), "mismatch vs bf16 ref"
    assert jnp.allclose(out, ref_f32, atol=5e-2, rtol=5e-2), "mismatch vs f32 ref"
    assert jnp.allclose(jnp.sum(out, axis=1), 1.0, atol=1e-5), "softmax norm"

    # Case 2: ragged small batch (block == full array dims, no padding pass).
    batch2 = 10
    key, kx2 = jax.random.split(key)
    x2 = jax.random.normal(kx2, (batch2, dimensions[0]), dtype=jnp.float32)
    out2 = jax.block_until_ready(mlp_forward(x2, params))
    assert out2.shape == (batch2, dimensions[-1])
    ref2 = mlp_reference(x2, params, match_kernel_precision=True)
    assert jnp.allclose(out2, ref2, atol=5e-3, rtol=5e-3), "mismatch (ragged)"

    # Case 3: multi-tile grid with a ragged last block (Pallas clips stores).
    batch3 = 300
    key, kx3 = jax.random.split(key)
    x3 = jax.random.normal(kx3, (batch3, dimensions[0]), dtype=jnp.float32)
    out3 = jax.block_until_ready(mlp_forward(x3, params, tile_b=128))
    assert out3.shape == (batch3, dimensions[-1])
    ref3 = mlp_reference(x3, params, match_kernel_precision=True)
    assert jnp.allclose(out3, ref3, atol=5e-3, rtol=5e-3), "mismatch (multi-tile)"

    print("KERNEL_OK")
</pallas_src>

<mosaic_0001>
module attributes {stable_mosaic.version = 11 : i64} {
  func.func @kernel(%arg0: i32, %arg1: memref<16x32xf32, #tpu.memory_space<vmem>>, %arg2: memref<32x64xbf16, #tpu.memory_space<vmem>>, %arg3: memref<1x64xf32, #tpu.memory_space<vmem>>, %arg4: memref<64x48xbf16, #tpu.memory_space<vmem>>, %arg5: memref<1x48xf32, #tpu.memory_space<vmem>>, %arg6: memref<48x16xbf16, #tpu.memory_space<vmem>>, %arg7: memref<1x16xf32, #tpu.memory_space<vmem>>, %arg8: memref<16x16xf32, #tpu.memory_space<vmem>>) attributes {dimension_semantics = [#tpu.dimension_semantics<parallel>], iteration_bounds = array<i64: 1>, scalar_prefetch = 0 : i64, scratch_operands = 0 : i64, tpu.core_type = #tpu.core_type<tc>, window_params = [{transform_indices = @transform_0, window_bounds = array<i64: 16, 32>}, {pipeline_mode = #tpu.pipeline_mode<synchronous>, transform_indices = @transform_1, window_bounds = array<i64: 32, 64>}, {pipeline_mode = #tpu.pipeline_mode<synchronous>, transform_indices = @transform_2, window_bounds = array<i64: 1, 64>}, {pipeline_mode = #tpu.pipeline_mode<synchronous>, transform_indices = @transform_3, window_bounds = array<i64: 64, 48>}, {pipeline_mode = #tpu.pipeline_mode<synchronous>, transform_indices = @transform_4, window_bounds = array<i64: 1, 48>}, {pipeline_mode = #tpu.pipeline_mode<synchronous>, transform_indices = @transform_5, window_bounds = array<i64: 48, 16>}, {pipeline_mode = #tpu.pipeline_mode<synchronous>, transform_indices = @transform_6, window_bounds = array<i64: 1, 16>}, {transform_indices = @transform_7, window_bounds = array<i64: 16, 16>}]} {
    %c0 = arith.constant 0 : index
    %c0_0 = arith.constant 0 : index
    %0 = vector.load %arg1[%c0, %c0_0] : memref<16x32xf32, #tpu.memory_space<vmem>>, vector<16x32xf32>
    %1 = arith.truncf %0 : vector<16x32xf32> to vector<16x32xbf16>
    %c0_1 = arith.constant 0 : index
    %c0_2 = arith.constant 0 : index
    %2 = vector.load %arg2[%c0_1, %c0_2] : memref<32x64xbf16, #tpu.memory_space<vmem>>, vector<32x64xbf16>
    %c0_3 = arith.constant 0 : index
    %c0_4 = arith.constant 0 : index
    %3 = vector.load %arg3[%c0_3, %c0_4] : memref<1x64xf32, #tpu.memory_space<vmem>>, vector<1x64xf32>
    %cst = arith.constant dense<0.000000e+00> : vector<16x64xf32>
    %4 = tpu.matmul %1, %2, %cst {dimension_numbers = #tpu.dot_dimension_numbers<[1], [0], [0], [1], [0, 0, 1, 1], [], []>} : vector<16x32xbf16>, vector<32x64xbf16>, vector<16x64xf32> -> vector<16x64xf32>
    %5 = vector.broadcast %3 : vector<1x64xf32> to vector<16x64xf32>
    %6 = arith.addf %4, %5 : vector<16x64xf32>
    %cst_5 = arith.constant 0.000000e+00 : f32
    %7 = vector.broadcast %cst_5 : f32 to vector<16x64xf32>
    %8 = arith.maximumf %6, %7 : vector<16x64xf32>
    %9 = arith.truncf %8 : vector<16x64xf32> to vector<16x64xbf16>
    %c0_6 = arith.constant 0 : index
    %c0_7 = arith.constant 0 : index
    %10 = vector.load %arg4[%c0_6, %c0_7] : memref<64x48xbf16, #tpu.memory_space<vmem>>, vector<64x48xbf16>
    %c0_8 = arith.constant 0 : index
    %c0_9 = arith.constant 0 : index
    %11 = vector.load %arg5[%c0_8, %c0_9] : memref<1x48xf32, #tpu.memory_space<vmem>>, vector<1x48xf32>
    %cst_10 = arith.constant dense<0.000000e+00> : vector<16x48xf32>
    %12 = tpu.matmul %9, %10, %cst_10 {dimension_numbers = #tpu.dot_dimension_numbers<[1], [0], [0], [1], [0, 0, 1, 1], [], []>} : vector<16x64xbf16>, vector<64x48xbf16>, vector<16x48xf32> -> vector<16x48xf32>
    %13 = vector.broadcast %11 : vector<1x48xf32> to vector<16x48xf32>
    %14 = arith.addf %12, %13 : vector<16x48xf32>
    %cst_11 = arith.constant 0.000000e+00 : f32
    %15 = vector.broadcast %cst_11 : f32 to vector<16x48xf32>
    %16 = arith.maximumf %14, %15 : vector<16x48xf32>
    %17 = arith.truncf %16 : vector<16x48xf32> to vector<16x48xbf16>
    %c0_12 = arith.constant 0 : index
    %c0_13 = arith.constant 0 : index
    %18 = vector.load %arg6[%c0_12, %c0_13] : memref<48x16xbf16, #tpu.memory_space<vmem>>, vector<48x16xbf16>
    %c0_14 = arith.constant 0 : index
    %c0_15 = arith.constant 0 : index
    %19 = vector.load %arg7[%c0_14, %c0_15] : memref<1x16xf32, #tpu.memory_space<vmem>>, vector<1x16xf32>
    %cst_16 = arith.constant dense<0.000000e+00> : vector<16x16xf32>
    %20 = tpu.matmul %17, %18, %cst_16 {dimension_numbers = #tpu.dot_dimension_numbers<[1], [0], [0], [1], [0, 0, 1, 1], [], []>} : vector<16x48xbf16>, vector<48x16xbf16>, vector<16x16xf32> -> vector<16x16xf32>
    %21 = vector.broadcast %19 : vector<1x16xf32> to vector<16x16xf32>
    %22 = arith.addf %20, %21 : vector<16x16xf32>
    %cst_17 = arith.constant dense<0xFF800000> : vector<16xf32>
    %23 = vector.multi_reduction <maximumf>, %22, %cst_17 [1] : vector<16x16xf32> to vector<16xf32>
    %24 = vector.shape_cast %23 : vector<16xf32> to vector<16x1xf32>
    %25 = vector.broadcast %24 : vector<16x1xf32> to vector<16x16xf32>
    %26 = arith.subf %22, %25 : vector<16x16xf32>
    %27 = math.exp %26 : vector<16x16xf32>
    %cst_18 = arith.constant dense<0.000000e+00> : vector<16xf32>
    %28 = vector.multi_reduction <add>, %27, %cst_18 [1] : vector<16x16xf32> to vector<16xf32>
    %29 = vector.shape_cast %28 : vector<16xf32> to vector<16x1xf32>
    %30 = vector.broadcast %29 : vector<16x1xf32> to vector<16x16xf32>
    %31 = arith.divf %27, %30 : vector<16x16xf32>
    %c0_19 = arith.constant 0 : index
    %c0_20 = arith.constant 0 : index
    %32 = vector.load %arg8[%c0_19, %c0_20] : memref<16x16xf32, #tpu.memory_space<vmem>>, vector<16x16xf32>
    tpu.vector_store %arg8[%c0_19, %c0_20], %31 {strides = array<i32>} : memref<16x16xf32, #tpu.memory_space<vmem>>, vector<16x16xf32>,
    return
  }
  func.func @transform_0(%arg0: i32) -> (i32, i32) {
    %c0_i32 = arith.constant 0 : i32
    %c0_i32_0 = arith.constant 0 : i32
    return %arg0, %c0_i32 : i32, i32
  }
  func.func @transform_1(%arg0: i32) -> (i32, i32) {
    %c0_i32 = arith.constant 0 : i32
    %c0_i32_0 = arith.constant 0 : i32
    %c0_i32_1 = arith.constant 0 : i32
    return %c0_i32, %c0_i32_0 : i32, i32
  }
  func.func @transform_2(%arg0: i32) -> (i32, i32) {
    %c0_i32 = arith.constant 0 : i32
    %c0_i32_0 = arith.constant 0 : i32
    %c0_i32_1 = arith.constant 0 : i32
    return %c0_i32, %c0_i32_0 : i32, i32
  }
  func.func @transform_3(%arg0: i32) -> (i32, i32) {
    %c0_i32 = arith.constant 0 : i32
    %c0_i32_0 = arith.constant 0 : i32
    %c0_i32_1 = arith.constant 0 : i32
    return %c0_i32, %c0_i32_0 : i32, i32
  }
  func.func @transform_4(%arg0: i32) -> (i32, i32) {
    %c0_i32 = arith.constant 0 : i32
    %c0_i32_0 = arith.constant 0 : i32
    %c0_i32_1 = arith.constant 0 : i32
    return %c0_i32, %c0_i32_0 : i32, i32
  }
  func.func @transform_5(%arg0: i32) -> (i32, i32) {
    %c0_i32 = arith.constant 0 : i32
    %c0_i32_0 = arith.constant 0 : i32
    %c0_i32_1 = arith.constant 0 : i32
    return %c0_i32, %c0_i32_0 : i32, i32
  }
  func.func @transform_6(%arg0: i32) -> (i32, i32) {
    %c0_i32 = arith.constant 0 : i32
    %c0_i32_0 = arith.constant 0 : i32
    %c0_i32_1 = arith.constant 0 : i32
    return %c0_i32, %c0_i32_0 : i32, i32
  }
  func.func @transform_7(%arg0: i32) -> (i32, i32) {
    %c0_i32 = arith.constant 0 : i32
    %c0_i32_0 = arith.constant 0 : i32
    return %arg0, %c0_i32 : i32, i32
  }
}

</mosaic_0001>

<bundles_post_ra>
// kernel: tpu_custom_call.1
= control target key start
LH: loop header
LB: loop body
LE: loop exit
PB: predicated region body
PF: predicated region fallthrough
CT: control target
= control target key end

     0   :  { %v409_v1 = vmov 0.0   ;;  %vm410_vm0 = vmmov 0   ;;  %vm54_vm1 = vcmask 261120   ;;  %s517_s0 = inlined_call_operand.vmem [shape: f32[16,32], index: 0, kind: input, shape index: {}]   ;;  %s518_s1 = inlined_call_operand.vmem [shape: bf16[32,64], index: 1, kind: input, shape index: {}]   ;;  %s519_s2 = inlined_call_operand.vmem [shape: f32[1,64], index: 2, kind: input, shape index: {}]   ;;  %s520_s3 = inlined_call_operand.vmem [shape: bf16[64,48], index: 3, kind: input, shape index: {}]   ;;  %s521_s4 = inlined_call_operand.vmem [shape: f32[1,48], index: 4, kind: input, shape index: {}]   ;;  %s522_s5 = inlined_call_operand.vmem [shape: bf16[48,16], index: 5, kind: input, shape index: {}]   ;;  %s523_s6 = inlined_call_operand.vmem [shape: f32[1,16], index: 6, kind: input, shape index: {}]   ;;  %s524_s7 = inlined_call_operand.hbm [shape: f32[16,16], index: 7, kind: output, shape index: {}]  }
   0x1   :  { %v368_v0 = vld [vmem:[%s518_s1] sm:$0xff]   ;;  %333 = vmatprep.subr.bf16.mxu0 %v409_v1  ;;  %v369_v2 = vld [vmem:[%s518_s1 + $0x8] sm:$0xff]   ;;  %341 = vmatprep.subr.bf16.mxu1 %v409_v1 }
   0x2   :  { %334 = vmatpush3.bf16.msra.mxu0 %v368_v0  ;;  %337 = vmatprep.mubr.msk.bf16.mxu0 %vm410_vm0, %v409_v1  ;;  %v28_v3 = vld [vmem:[%s517_s0] sm:$0xff]  ;;  %v29_v4 = vld [vmem:[%s517_s0 + $0x8] sm:$0xff] }
   0x3   :  { %335 = vmatprep.subr.bf16.mxu0 %v409_v1  ;;  %v370_v5 = vld [vmem:[%s520_s3] sm:$0xff]   ;;  %349 = vmatprep.mubr.msk.bf16.mxu1 %vm410_vm0, %v409_v1  ;;  %v371_v6 = vld [vmem:[%s520_s3 + $0x8] sm:$0xff]   ;;  %v30_v7 = vpack.c.bf16 %v29_v4, %v28_v3 }
   0x4   :  { %342 = vmatpush3.bf16.msra.mxu1 %v370_v5 }
   0x5   :  { %343 = vmatprep.subr.bf16.mxu1 %v409_v1 }
   0x6   :  { %336 = vmatpush3.bf16.msra.mxu0 %v369_v2 }
   0x7   :  { %353 = vmatprep.subr.bf16.mxu0 %v409_v1 }
   0x8   :  { %12 = vsyncpa [#allocation3], 0  ;;  %344 = vmatpush3.bf16.msra.mxu1 %v371_v6  ;;  %v372_v8 = vld [vmem:[%s520_s3 + $0x10] sm:$0xff]   ;;  %v373_v9 = vld [vmem:[%s520_s3 + $0x18] sm:$0xff]   ;;  %vm141_vm2 = vcmask 523264   ;;  %vm220_vm3 = vcmask 392192  }
   0x9   :  { %338 = vmatmul.mubr.msk.bf16.vlgmr.msra.gmra.mrb[0].mxu0 %vm54_vm1, %v30_v7  ;;  %345 = vmatprep.subr.bf16.mxu1 %v409_v1  ;;  %v374_v10 = vld [vmem:[%s522_s5] sm:$0xff]   ;;  %v375_v21 = vld [vmem:[%s522_s5 + $0x8] sm:$0xff]   ;;  %v376_v22 = vld [vmem:[%s522_s5 + $0x10] sm:$0xff]   ;;  %vm265_vm4 = vcmask 130048  }
   0xa   :  { %359 = vmatprep.mubr.msk.bf16.mxu0 %vm410_vm0, %v409_v1  ;;  %354 = vmatpush3.bf16.msra.mxu0 %v374_v10  ;;  %v306_v11 = vld [vmem:[%s519_s2] ss:$0 sm:$0xff] }
   0xb   :  { %355 = vmatprep.subr.bf16.mxu0 %v409_v1  ;;  %v310_v23 = vld [vmem:[%s521_s4] ss:$0 sm:$0xff]  ;;  %s411_s4 = smov [#allocation2]  }
   0xc   :  { %346 = vmatpush3.bf16.msra.mxu1 %v372_v8  ;;  %v316_v33 = vld [vmem:[%s523_s6] ss:$0 sm:$0xff]  ;;  %s295_s5 = sshll.u32 %s411_s4, 4  ;;  %s296_s5 = int_to_ptr.vmem [resolvable:$true] %s295_s5 }
   0xd   :  { %347 = vmatprep.subr.bf16.mxu1 %v409_v1  ;;  %s385_s6 = scalar_lea.vmem %s296_s5, 256  ;;  %p390_p1 = scmp.lt.s32.totalorder %s296_s5, %s296_s5 }
   0xe   :  { %356 = vmatpush3.bf16.msra.mxu0 %v375_v21  ;;  %p386_p0 = scmp.ne.s32.totalorder %s296_s5, %s385_s6  ;;  %p391_p2 = scmp.lt.s32.totalorder %s385_s6, %s385_s6 }
   0xf   :  { %357 = vmatprep.subr.bf16.mxu0 %v409_v1 }
  0x10   :  { %348 = vmatpush3.bf16.msra.mxu1 %v373_v9  ;;  %p392_p3 = por %p391_p2, %p390_p1 }
  0x12   :  { %358 = vmatpush3.bf16.msra.mxu0 %v376_v22  ;;  %p393_p4 = pnand %p392_p3, %p386_p0 }
  0xdc   :  { %v92_v12 = vpop.f32.mrb[0].mxu0 }
  0xdd   :  { %v93_v13 = vadd.f32 %v306_v11, %v92_v12  ;;  %v339_v14 = vpop.f32.mrb[1].mxu0 }
  0xde   :  { %v95_v15 = vpop.f32.mrb[2].mxu0 }
  0xdf   :  { %v96_v16 = vadd.f32 %v306_v11, %v95_v15  ;;  %v340_v17 = vpop.f32.mrb[3].mxu0  ;;  %v99_v18 = vmax.f32 %v93_v13, 0.0 }
  0xe1   :  { %v100_v19 = vmax.f32 %v96_v16, 0.0 }
  0xe3   :  { %v101_v20 = vpack.c.bf16 %v100_v19, %v99_v18 }
  0xe5   :  { %350 = vmatmul.mubr.msk.bf16.vlgmr.msra.gmra.mrb[0].mxu1 %vm141_vm2, %v101_v20 }
 0x1b8   :  { %v179_v24 = vpop.f32.mrb[0].mxu1 }
 0x1b9   :  { %v180_v25 = vadd.f32 %v310_v23, %v179_v24  ;;  %v351_v26 = vpop.f32.mrb[1].mxu1 }
 0x1ba   :  { %v182_v27 = vpop.f32.mrb[2].mxu1 }
 0x1bb   :  { %v183_v28 = vadd.f32 %v310_v23, %v182_v27  ;;  %v352_v29 = vpop.f32.mrb[3].mxu1  ;;  %v186_v30 = vmax.f32 %v180_v25, 0.0 }
 0x1bd   :  { %v187_v31 = vmax.f32 %v183_v28, 0.0 }
 0x1bf   :  { %v188_v32 = vpack.c.bf16 %v187_v31, %v186_v30 }
 0x1c1   :  { %360 = vmatmul.mubr.msk.bf16.vlgmr.msra.gmra.mrb[4].mxu0 %vm220_vm3, %v188_v32 }
 0x294   :  { %v258_v34 = vpop.f32.mrb[4].mxu0 }
 0x295   :  { %v259_v35 = vadd.f32 %v316_v33, %v258_v34  ;;  %v361_v36 = vpop.f32.mrb[5].mxu0 }
 0x296   :  { %v261_v37 = vpop.f32.mrb[6].mxu0 }
 0x297   :  { %v262_v38 = vadd.f32 %v316_v33, %v261_v37  ;;  %v362_v39 = vpop.f32.mrb[7].mxu0  ;;  %v266_v40 = vsel %vm265_vm4, %v259_v35, -inf }
 0x298   :  { %267 = vmax.xlane.f32.xlu0 %v266_v40 }
 0x299   :  { %v269_v41 = vsel %vm265_vm4, %v262_v38, -inf }
 0x29c   :  { %270 = vmax.xlane.f32.xlu0 %v269_v41 }
 0x325   :  { %v268_v42 = vpop.xlane.xlu0 %267 }
 0x326   :  { %v272_v43 = vsub.f32 %v259_v35, %v268_v42 }
 0x328   :  { %v274_v44 = vmul.f32 1.442695, %v272_v43 }
 0x329   :  { %v271_v45 = vpop.xlane.xlu0 %270 }
 0x32a   :  { %377 = vpow2.f32 %v274_v44  ;;  %v273_v46 = vsub.f32 %v262_v38, %v271_v45 }
 0x32c   :  { %v276_v47 = vmul.f32 1.442695, %v273_v46 }
 0x32e   :  { %379 = vpow2.f32 %v276_v47 }
 0x334   :  { %v378_v48 = vpop.eup %377 }
 0x335   :  { %v278_v49 = vsel %vm265_vm4, %v378_v48, 0.0 }
 0x336   :  { %279 = vadd.xlane.f32.xlu1 %v278_v49 }
 0x338   :  { %v380_v50 = vpop.eup %379 }
 0x339   :  { %v281_v51 = vsel %vm265_vm4, %v380_v50, 0.0 }
 0x33a   :  { %282 = vadd.xlane.f32.xlu1 %v281_v51 }
 0x3c3   :  { %v280_v52 = vpop.xlane.xlu1 %279 }
 0x3c4   :  { %381 = vrcp.f32 %v280_v52 }
 0x3c7   :  { %v283_v53 = vpop.xlane.xlu1 %282 }
 0x3c8   :  { %383 = vrcp.f32 %v283_v53 }
 0x3ce   :  { %v382_v54 = vpop.eup %381 }
 0x3cf   :  { %v285_v55 = vmul.f32 %v382_v54, %v378_v48 }
 0x3d1   :  { %288 = vst.msk [vmem:[#allocation2] sm:$0xff] %vm265_vm4, %v285_v55 }
 0x3d2   :  { %v384_v56 = vpop.eup %383 }
 0x3d3   :  { %v287_v57 = vmul.f32 %v384_v56, %v380_v50 }
 0x3d5   :  { %289 = vst.msk [vmem:[#allocation2 + $0x8] sm:$0xff] %vm265_vm4, %v287_v57 }
 0x3d6   :  { %396 = shalt.err (!%p393_p4)
}
 0x3d7   :  { %s397_s27 = scalar_lea.hbm %s524_s7, 256 }
 0x3d8   :  { %p398_p5 = scmp.ne.s32.totalorder %s524_s7, %s397_s27  ;;  %p401_p6 = scmp.lt.u32.totalorder %s397_s27, %s524_s7 }
 0x3da   :  { %p403_p7 = pnand %p401_p6, %p398_p5 }
 0x3dc   :  { %406 = shalt.err (!%p403_p7)
}
 0x3dd   :  { %s412_s9 = smov 128   ;;  %s413_s10 = smov 8  }
 0x3de   :  { %301 = dma.vmem_to_hbm [thread:$0]  %s296_s5, 256, %s524_s7, [#allocation3], %s412_s9, %s412_s9, %s413_s10  }
 0x3df   :  { %407 = dma.done.wait [#allocation3], 256  }
 0x3e0   :  { %408 = vsyncadd [#allocation3], 4294967040 }
 0x3e1   :  { %305 = vsyncpa [#allocation3], 1 }

</bundles_post_ra>
